<compile_context>
chip_gen: v7x
topology: tpu7x:2x2x1
jax: 0.10.0
libtpu: 0.0.40
codegen_flags: <defaults>
</compile_context>

<pallas_src>
import functools

import jax
import jax.numpy as jnp
from jax import lax
from jax.experimental import pallas as pl
from jax.experimental.pallas import tpu as pltpu


def _i32(x):
    """Python int -> two's-complement int32 value (for >2^31-1 hash constants)."""
    x &= 0xFFFFFFFF
    return x - (1 << 32) if x >= (1 << 31) else x


def _lrshift(x, k):
    """Logical right shift of an int32 array by static k."""
    return (x >> k) & jnp.int32((1 << (32 - k)) - 1)


def _fmix32(x):
    """murmur3 finalizer on int32 (wraparound int32 mul == uint32 mul mod 2^32)."""
    x = x ^ _lrshift(x, 16)
    x = x * jnp.int32(_i32(0x85EBCA6B))
    x = x ^ _lrshift(x, 13)
    x = x * jnp.int32(_i32(0xC2B2AE35))
    x = x ^ _lrshift(x, 16)
    return x


def _keep_mask(shape, seed, layer_idx, row_offset, keep_threshold):
    """Boolean keep-mask for dropout, keyed on (seed, layer, global row, col)."""
    r = lax.broadcasted_iota(jnp.int32, shape, 0) + row_offset
    c = lax.broadcasted_iota(jnp.int32, shape, 1)
    x = r * jnp.int32(_i32(0x9E3779B1)) + c
    x = x ^ (seed * jnp.int32(_i32(0x85EBCA77))
             + jnp.int32((layer_idx * 0x632BE5A7) & 0x7FFFFFFF))
    x = _fmix32(x)
    bits31 = x & jnp.int32(0x7FFFFFFF)           # 31 uniform bits
    return bits31 < jnp.int32(keep_threshold)    # keep with prob (1 - p)


def prenet_kernel(seed_ref, x_ref, *rest, p_dropout, num_layers):
    # args: scalar-prefetch seed (SMEM), input tile, resident weights..., out tile
    w_refs = rest[:num_layers]
    o_ref = rest[num_layers]
    tile_rows = o_ref.shape[0]
    row_off = pl.program_id(0) * tile_rows       # global row offset of this tile
    seed = seed_ref[0]

    # threshold = round((1-p) * 2^31), clamped into int31 range (static).
    keep_threshold = min(int((1.0 - p_dropout) * 2147483648.0), 2147483647)

    h = x_ref[...].astype(jnp.float32)
    for li, w_ref in enumerate(w_refs):
        # bf16 operands -> native MXU rate; f32 accumulation.
        h = jnp.dot(h.astype(jnp.bfloat16), w_ref[...],
                    preferred_element_type=jnp.float32)
        h = jnp.maximum(h, 0.0)                                   # ReLU (VPU)
        if p_dropout > 0.0:
            # Pure zero-mask: the 1/(1-p) scales were folded into the next
            # layer's weights host-side (last layer's scale applied below).
            keep = _keep_mask(h.shape, seed, li, row_off, keep_threshold)
            h = jnp.where(keep, h, jnp.float32(0.0))
    if p_dropout > 0.0:
        h = h * jnp.float32(1.0 / (1.0 - p_dropout))              # last layer's scale
    o_ref[...] = h.astype(o_ref.dtype)


def prenet_forward(x2d, weights_t, p_dropout, seed=0, tile_rows=None):
    """x2d: (rows, in_dim) f32.  weights_t: list of (in_f, out_f) f32 arrays (W^T)."""
    rows, in_dim = x2d.shape
    out_dim = weights_t[-1].shape[1]
    n_layers = len(weights_t)
    p = float(p_dropout)

    # Host-side weight prep: fold layer i's inverted-dropout scale into layer
    # i+1's weights, then cast to bf16 once for the MXU.
    ws = [jnp.asarray(w, jnp.float32) for w in weights_t]
    if p > 0.0:
        scale = jnp.float32(1.0 / (1.0 - p))
        ws = [ws[0]] + [w * scale for w in ws[1:]]
    ws = [w.astype(jnp.bfloat16) for w in ws]

    # Row tiling: single tile for small inputs; 512-row (multiple of 256) tiles
    # at scale so x/out auto-double-buffer while weights stay VMEM-resident.
    if tile_rows is None:
        tile_rows = rows if rows <= 512 else 512
    grid = (pl.cdiv(rows, tile_rows),)

    kernel = functools.partial(prenet_kernel, p_dropout=p, num_layers=n_layers)

    grid_spec = pltpu.PrefetchScalarGridSpec(
        num_scalar_prefetch=1,                      # seed lands in SMEM
        grid=grid,
        in_specs=[pl.BlockSpec((tile_rows, in_dim), lambda i, s: (i, 0))]
        + [pl.BlockSpec(w.shape, lambda i, s: (0, 0)) for w in ws],
        out_specs=pl.BlockSpec((tile_rows, out_dim), lambda i, s: (i, 0)),
    )

    return pl.pallas_call(
        kernel,
        out_shape=jax.ShapeDtypeStruct((rows, out_dim), jnp.float32),
        grid_spec=grid_spec,
        compiler_params=pltpu.CompilerParams(dimension_semantics=("parallel",)),
    )(jnp.asarray([seed], dtype=jnp.int32), x2d, *ws)


if __name__ == "__main__":
    key = jax.random.PRNGKey(0)

    # Module hyperparameters (synthetic, deterministic)
    B, T = 2, 8
    in_dim = 64
    sizes = [128, 128]
    p_prenet_dropout = 0.5

    # Deterministic parameter init: LinearNorm(in, out, bias=False) with
    # xavier-uniform weights of torch shape (out, in); we store W^T = (in, out).
    in_sizes = [in_dim] + sizes[:-1]
    weights_t = []
    wkey = key
    for in_size, out_size in zip(in_sizes, sizes):
        wkey, sub = jax.random.split(wkey)
        bound = (6.0 / (in_size + out_size)) ** 0.5
        w = jax.random.uniform(sub, (out_size, in_size), jnp.float32, -bound, bound)
        weights_t.append(w.T)  # (in, out)

    # Input: (B, T, in_dim), flattened to (B*T, in_dim) for the kernel.
    key, xkey = jax.random.split(key)
    x = jax.random.normal(xkey, (B, T, in_dim), dtype=jnp.float32)
    x2d = x.reshape(B * T, in_dim)

    # Correctness check with dropout disabled (deterministic): reference uses
    # the same bf16-operand / f32-accumulate matmul as the kernel.
    out_nodrop = jax.block_until_ready(prenet_forward(x2d, weights_t, p_dropout=0.0, seed=0))
    ref = x2d
    for w in weights_t:
        ref = jnp.maximum(
            jnp.dot(ref.astype(jnp.bfloat16), w.astype(jnp.bfloat16),
                    preferred_element_type=jnp.float32), 0.0)
    assert jnp.allclose(out_nodrop, ref, atol=1e-2, rtol=1e-2), "mismatch vs reference"

    # Actual Prenet semantics: dropout always on (training=True), p=0.5.
    out = jax.block_until_ready(
        prenet_forward(x2d, weights_t, p_dropout=p_prenet_dropout, seed=1234))
    out = out.reshape(B, T, sizes[-1])
    assert out.shape == (B, T, sizes[-1])
    assert bool(jnp.all(jnp.isfinite(out)))
    assert bool(jnp.all(out >= 0.0))          # relu then zero/scale keeps non-negativity
    assert not bool(jnp.allclose(out.reshape(B * T, -1), out_nodrop))  # dropout did something

    # TODO(synk): MaskedBatchNorm1d branch (prenet_batchnorm=True) not implemented;
    # this config instantiates the module with prenet_batchnorm=False.
    print("KERNEL_OK")
</pallas_src>

<mosaic_0001>
module attributes {stable_mosaic.version = 11 : i64} {
  func.func @prenet_kernel(%arg0: i32, %arg1: memref<1xi32, #tpu.memory_space<smem>>, %arg2: memref<16x64xf32, #tpu.memory_space<vmem>>, %arg3: memref<64x128xbf16, #tpu.memory_space<vmem>>, %arg4: memref<128x128xbf16, #tpu.memory_space<vmem>>, %arg5: memref<16x128xf32, #tpu.memory_space<vmem>>) attributes {dimension_semantics = [#tpu.dimension_semantics<parallel>], iteration_bounds = array<i64: 1>, scalar_prefetch = 1 : i64, scratch_operands = 0 : i64, tpu.core_type = #tpu.core_type<tc>, window_params = [{transform_indices = @transform_0, window_bounds = array<i64: 16, 64>}, {pipeline_mode = #tpu.pipeline_mode<synchronous>, transform_indices = @transform_1, window_bounds = array<i64: 64, 128>}, {pipeline_mode = #tpu.pipeline_mode<synchronous>, transform_indices = @transform_2, window_bounds = array<i64: 128, 128>}, {transform_indices = @transform_3, window_bounds = array<i64: 16, 128>}]} {
    %c0 = arith.constant 0 : index
    %c0_0 = arith.constant 0 : index
    %0 = vector.load %arg2[%c0, %c0_0] : memref<16x64xf32, #tpu.memory_space<vmem>>, vector<16x64xf32>
    %1 = arith.truncf %0 : vector<16x64xf32> to vector<16x64xbf16>
    %c0_1 = arith.constant 0 : index
    %c0_2 = arith.constant 0 : index
    %2 = vector.load %arg3[%c0_1, %c0_2] : memref<64x128xbf16, #tpu.memory_space<vmem>>, vector<64x128xbf16>
    %cst = arith.constant dense<0.000000e+00> : vector<16x128xf32>
    %3 = tpu.matmul %1, %2, %cst {dimension_numbers = #tpu.dot_dimension_numbers<[1], [0], [0], [1], [0, 0, 1, 1], [], []>} : vector<16x64xbf16>, vector<64x128xbf16>, vector<16x128xf32> -> vector<16x128xf32>
    %cst_3 = arith.constant 0.000000e+00 : f32
    %4 = vector.broadcast %cst_3 : f32 to vector<16x128xf32>
    %5 = arith.maximumf %3, %4 : vector<16x128xf32>
    %6 = arith.truncf %5 : vector<16x128xf32> to vector<16x128xbf16>
    %c0_4 = arith.constant 0 : index
    %c0_5 = arith.constant 0 : index
    %7 = vector.load %arg4[%c0_4, %c0_5] : memref<128x128xbf16, #tpu.memory_space<vmem>>, vector<128x128xbf16>
    %cst_6 = arith.constant dense<0.000000e+00> : vector<16x128xf32>
    %8 = tpu.matmul %6, %7, %cst_6 {dimension_numbers = #tpu.dot_dimension_numbers<[1], [0], [0], [1], [0, 0, 1, 1], [], []>} : vector<16x128xbf16>, vector<128x128xbf16>, vector<16x128xf32> -> vector<16x128xf32>
    %cst_7 = arith.constant 0.000000e+00 : f32
    %9 = vector.broadcast %cst_7 : f32 to vector<16x128xf32>
    %10 = arith.maximumf %8, %9 : vector<16x128xf32>
    %c0_8 = arith.constant 0 : index
    %c0_9 = arith.constant 0 : index
    %11 = vector.load %arg5[%c0_8, %c0_9] : memref<16x128xf32, #tpu.memory_space<vmem>>, vector<16x128xf32>
    tpu.vector_store %arg5[%c0_8, %c0_9], %10 {strides = array<i32>} : memref<16x128xf32, #tpu.memory_space<vmem>>, vector<16x128xf32>,
    return
  }
  func.func @transform_0(%arg0: i32, %arg1: memref<1xi32, #tpu.memory_space<smem>>) -> (i32, i32) {
    %c0_i32 = arith.constant 0 : i32
    %c0_i32_0 = arith.constant 0 : i32
    return %arg0, %c0_i32 : i32, i32
  }
  func.func @transform_1(%arg0: i32, %arg1: memref<1xi32, #tpu.memory_space<smem>>) -> (i32, i32) {
    %c0_i32 = arith.constant 0 : i32
    %c0_i32_0 = arith.constant 0 : i32
    %c0_i32_1 = arith.constant 0 : i32
    return %c0_i32, %c0_i32_0 : i32, i32
  }
  func.func @transform_2(%arg0: i32, %arg1: memref<1xi32, #tpu.memory_space<smem>>) -> (i32, i32) {
    %c0_i32 = arith.constant 0 : i32
    %c0_i32_0 = arith.constant 0 : i32
    %c0_i32_1 = arith.constant 0 : i32
    return %c0_i32, %c0_i32_0 : i32, i32
  }
  func.func @transform_3(%arg0: i32, %arg1: memref<1xi32, #tpu.memory_space<smem>>) -> (i32, i32) {
    %c0_i32 = arith.constant 0 : i32
    %c0_i32_0 = arith.constant 0 : i32
    return %arg0, %c0_i32 : i32, i32
  }
}

</mosaic_0001>

<bundles_post_ra>
// kernel: tpu_custom_call.1
= control target key start
LH: loop header
LB: loop body
LE: loop exit
PB: predicated region body
PF: predicated region fallthrough
CT: control target
= control target key end

     0   :  { %10 = vsyncpa [#allocation5], 0  ;;  %s539_s0 = inlined_call_operand.<no memory space> [shape: s32[1], index: 0, kind: input, shape index: {}]   ;;  %s540_s1 = inlined_call_operand.hbm [shape: f32[16,64], index: 1, kind: input, shape index: {}]   ;;  %s541_s2 = inlined_call_operand.hbm [shape: bf16[64,128], index: 2, kind: input, shape index: {}]   ;;  %s542_s3 = inlined_call_operand.hbm [shape: bf16[128,128], index: 3, kind: input, shape index: {}]   ;;  %s543_s4 = inlined_call_operand.hbm [shape: f32[16,128], index: 4, kind: output, shape index: {}]  }
   0x1   :  { %11 = vsyncpa [#allocation8], 0 }
   0x2   :  { %12 = vsyncpa [#allocation6], 0  ;;  %s444_s15 = smov [#allocation7]   ;;  %s350_s18 = scalar_lea.hbm %s541_s2, 512 }
   0x3   :  { %s30_s16 = sshll.u32 %s444_s15, 4  ;;  %p351_p0 = scmp.ne.s32.totalorder %s541_s2, %s350_s18  ;;  %s31_s16 = int_to_ptr.vmem [resolvable:$true] %s30_s16 }
   0x4   :  { %p354_p1 = scmp.lt.u32.totalorder %s350_s18, %s541_s2 }
   0x6   :  { %p356_p2 = pnand %p354_p1, %p351_p0 }
   0x8   :  { %359 = shalt.err (!%p356_p2)
}
   0x9   :  { %s360_s23 = scalar_lea.vmem %s31_s16, 512  ;;  %p365_p4 = scmp.lt.s32.totalorder %s31_s16, %s31_s16 }
   0xa   :  { %p361_p3 = scmp.ne.s32.totalorder %s31_s16, %s360_s23  ;;  %p366_p5 = scmp.lt.s32.totalorder %s360_s23, %s360_s23 }
   0xc   :  { %p367_p6 = por %p366_p5, %p365_p4 }
   0xe   :  { %p368_p7 = pnand %p367_p6, %p361_p3 }
  0x10   :  { %371 = shalt.err (!%p368_p7)
}
  0x11   :  { %s445_s24 = smov 64   ;;  %s446_s25 = smov 4  }
  0x12   :  { %36 = dma.hbm_to_vmem [thread:$0]  %s541_s2, 512, %s31_s16, [#allocation8], %s445_s24, %s445_s24, %s446_s25  }
  0x13   :  { %s447_s28 = smov [#allocation4]   ;;  %s372_s6 = scalar_lea.hbm %s540_s1, 256 }
  0x14   :  { %s18_s29 = sshll.u32 %s447_s28, 4  ;;  %p373_p8 = scmp.ne.s32.totalorder %s540_s1, %s372_s6  ;;  %s19_s29 = int_to_ptr.vmem [resolvable:$true] %s18_s29 }
  0x15   :  { %p376_p9 = scmp.lt.u32.totalorder %s372_s6, %s540_s1 }
  0x17   :  { %p378_p10 = pnand %p376_p9, %p373_p8 }
  0x19   :  { %381 = shalt.err (!%p378_p10)
}
  0x1a   :  { %s382_s11 = scalar_lea.vmem %s19_s29, 256  ;;  %p387_p12 = scmp.lt.s32.totalorder %s19_s29, %s19_s29 }
  0x1b   :  { %p383_p11 = scmp.ne.s32.totalorder %s19_s29, %s382_s11  ;;  %p388_p13 = scmp.lt.s32.totalorder %s382_s11, %s382_s11 }
  0x1d   :  { %p389_p0 = por %p388_p13, %p387_p12 }
  0x1f   :  { %p390_p1 = pnand %p389_p0, %p383_p11 }
  0x21   :  { %393 = shalt.err (!%p390_p1)
}
  0x22   :  { %s448_s2 = smov 128   ;;  %s449_s12 = smov 8  }
  0x23   :  { %24 = dma.hbm_to_vmem [thread:$0]  %s540_s1, 256, %s19_s29, [#allocation5], %s448_s2, %s448_s2, %s449_s12  }
  0x24   :  { %s450_s15 = smov [#allocation9]   ;;  %s394_s18 = scalar_lea.hbm %s542_s3, 1024 }
  0x25   :  { %s42_s16 = sshll.u32 %s450_s15, 4  ;;  %p395_p2 = scmp.ne.s32.totalorder %s542_s3, %s394_s18  ;;  %s43_s16 = int_to_ptr.vmem [resolvable:$true] %s42_s16 }
  0x26   :  { %p398_p3 = scmp.lt.u32.totalorder %s394_s18, %s542_s3 }
  0x28   :  { %p400_p4 = pnand %p398_p3, %p395_p2 }
  0x2a   :  { %403 = shalt.err (!%p400_p4)
}
  0x2b   :  { %s404_s23 = scalar_lea.vmem %s43_s16, 1024  ;;  %p409_p6 = scmp.lt.s32.totalorder %s43_s16, %s43_s16 }
  0x2c   :  { %p405_p5 = scmp.ne.s32.totalorder %s43_s16, %s404_s23  ;;  %p410_p7 = scmp.lt.s32.totalorder %s404_s23, %s404_s23 }
  0x2e   :  { %p411_p8 = por %p410_p7, %p409_p6 }
  0x30   :  { %p412_p9 = pnand %p411_p8, %p405_p5 }
  0x32   :  { %415 = shalt.err (!%p412_p9)
}
  0x33   :  { %48 = dma.hbm_to_vmem [thread:$0]  %s542_s3, 1024, %s43_s16, [#allocation8], %s445_s24, %s445_s24, %s446_s25  }
  0x34   :  { %438 = dma.done.wait [#allocation5], 256  }
  0x35   :  { %439 = vsyncadd [#allocation5], 4294967040 }
  0x36   :  { %440 = dma.done.wait [#allocation8], 1536  }
  0x37   :  { %441 = vsyncadd [#allocation8], 4294965760  ;;  %v451_v0 = vmov 0.0   ;;  %vm452_vm0 = vmmov 0   ;;  %v338_v1 = vld [vmem:[#allocation7] sm:$0xff]   ;;  %v339_v2 = vld [vmem:[#allocation7 + $0x8] sm:$0xff]  }
  0x38   :  { %296 = vmatprep.subr.bf16.mxu0 %v451_v0  ;;  %304 = vmatprep.mubr.msk.bf16.mxu0 %vm452_vm0, %v451_v0  ;;  %v342_v3 = vld [vmem:[#allocation9] sm:$0xff]   ;;  %v340_v4 = vld [vmem:[#allocation7 + $0x10] sm:$0xff]   ;;  %v343_v5 = vld [vmem:[#allocation9 + $0x8] sm:$0xff]   ;;  %vm94_vm1 = vcmask 523264   ;;  %s453_s3 = smov [#allocation10]  }
  0x39   :  { %308 = vmatprep.subr.bf16.mxu1 %v451_v0  ;;  %324 = vmatprep.mubr.msk.bf16.mxu1 %vm452_vm0, %v451_v0  ;;  %v341_v6 = vld [vmem:[#allocation7 + $0x18] sm:$0xff]   ;;  %v59_v7 = vld [vmem:[#allocation4] sm:$0xff]  ;;  %v346_v12 = vld [vmem:[#allocation9 + $0x20] sm:$0xff]   ;;  %s256_s24 = sshll.u32 %s453_s3, 4  ;;  %s257_s24 = int_to_ptr.vmem [resolvable:$true] %s256_s24 }
  0x3a   :  { %297 = vmatpush3.bf16.msra.mxu0 %v338_v1  ;;  %309 = vmatpush3.bf16.msra.mxu1 %v342_v3  ;;  %v60_v8 = vld [vmem:[#allocation4 + $0x8] sm:$0xff]  ;;  %v344_v9 = vld [vmem:[#allocation9 + $0x10] sm:$0xff]   ;;  %v347_v13 = vld [vmem:[#allocation9 + $0x28] sm:$0xff]   ;;  %s416_s25 = scalar_lea.vmem %s257_s24, 256  ;;  %p421_p11 = scmp.lt.s32.totalorder %s257_s24, %s257_s24 }
  0x3b   :  { %298 = vmatprep.subr.bf16.mxu0 %v451_v0  ;;  %310 = vmatprep.subr.bf16.mxu1 %v451_v0  ;;  %v61_v10 = vpack.c.bf16 %v60_v8, %v59_v7  ;;  %v345_v11 = vld [vmem:[#allocation9 + $0x18] sm:$0xff]   ;;  %v348_v14 = vld [vmem:[#allocation9 + $0x30] sm:$0xff]   ;;  %p417_p10 = scmp.ne.s32.totalorder %s257_s24, %s416_s25  ;;  %p422_p12 = scmp.lt.s32.totalorder %s416_s25, %s416_s25 }
  0x3c   :  { %v349_v15 = vld [vmem:[#allocation9 + $0x38] sm:$0xff]  }
  0x3d   :  { %p423_p13 = por %p422_p12, %p421_p11 }
  0x3e   :  { %299 = vmatpush3.bf16.msra.mxu0 %v339_v2  ;;  %311 = vmatpush3.bf16.msra.mxu1 %v343_v5 }
  0x3f   :  { %300 = vmatprep.subr.bf16.mxu0 %v451_v0  ;;  %312 = vmatprep.subr.bf16.mxu1 %v451_v0  ;;  %p424_p0 = pnand %p423_p13, %p417_p10 }
  0x42   :  { %301 = vmatpush3.bf16.msra.mxu0 %v340_v4  ;;  %313 = vmatpush3.bf16.msra.mxu1 %v344_v9 }
  0x43   :  { %302 = vmatprep.subr.bf16.mxu0 %v451_v0  ;;  %314 = vmatprep.subr.bf16.mxu1 %v451_v0 }
  0x46   :  { %303 = vmatpush3.bf16.msra.mxu0 %v341_v6  ;;  %315 = vmatpush3.bf16.msra.mxu1 %v345_v11 }
  0x47   :  { %316 = vmatprep.subr.bf16.mxu1 %v451_v0 }
  0x49   :  { %305 = vmatmul.mubr.msk.bf16.vlgmr.msra.gmra.mrb[0].mxu0 %vm94_vm1, %v61_v10 }
  0x4a   :  { %317 = vmatpush3.bf16.msra.mxu1 %v346_v12 }
  0x4b   :  { %318 = vmatprep.subr.bf16.mxu1 %v451_v0 }
  0x4e   :  { %319 = vmatpush3.bf16.msra.mxu1 %v347_v13 }
  0x4f   :  { %320 = vmatprep.subr.bf16.mxu1 %v451_v0 }
  0x52   :  { %321 = vmatpush3.bf16.msra.mxu1 %v348_v14 }
  0x53   :  { %322 = vmatprep.subr.bf16.mxu1 %v451_v0 }
  0x56   :  { %323 = vmatpush3.bf16.msra.mxu1 %v349_v15 }
 0x11c   :  { %v132_v16 = vpop.f32.mrb[0].mxu0 }
 0x11d   :  { %v306_v17 = vpop.f32.mrb[1].mxu0  ;;  %v139_v19 = vmax.f32 %v132_v16, 0.0 }
 0x11e   :  { %v135_v18 = vpop.f32.mrb[2].mxu0 }
 0x11f   :  { %v140_v20 = vmax.f32 %v135_v18, 0.0  ;;  %v307_v21 = vpop.f32.mrb[3].mxu0 }
 0x121   :  { %v141_v22 = vpack.c.bf16 %v140_v20, %v139_v19 }
 0x123   :  { %325 = vmatmul.mubr.bf16.vlgmr.msra.gmra.mrb[0].mxu1 %v141_v22 }
 0x1f6   :  { %v240_v23 = vpop.f32.mrb[0].mxu1 }
 0x1f7   :  { %v247_v24 = vmax.f32 %v240_v23, 0.0  ;;  %v326_v25 = vpop.f32.mrb[1].mxu1 }
 0x1f8   :  { %v243_v26 = vpop.f32.mrb[2].mxu1 }
 0x1f9   :  { %249 = vst [vmem:[#allocation10] sm:$0xff] %v247_v24  ;;  %v248_v27 = vmax.f32 %v243_v26, 0.0  ;;  %v327_v28 = vpop.f32.mrb[3].mxu1 }
 0x1fb   :  { %250 = vst [vmem:[#allocation10 + $0x8] sm:$0xff] %v248_v27 }
 0x1fc   :  { %427 = shalt.err (!%p424_p0)
}
 0x1fd   :  { %s428_s29 = scalar_lea.hbm %s543_s4, 256 }
 0x1fe   :  { %p429_p1 = scmp.ne.s32.totalorder %s543_s4, %s428_s29  ;;  %p432_p2 = scmp.lt.u32.totalorder %s428_s29, %s543_s4 }
 0x200   :  { %p434_p3 = pnand %p432_p2, %p429_p1 }
 0x202   :  { %437 = shalt.err (!%p434_p3)
}
 0x203   :  { %262 = dma.vmem_to_hbm [thread:$0]  %s257_s24, 256, %s543_s4, [#allocation6], %s448_s2, %s448_s2, %s449_s12  }
 0x204   :  { %442 = dma.done.wait [#allocation6], 256  }
 0x205   :  { %443 = vsyncadd [#allocation6], 4294967040 }
 0x206   :  { %266 = vsyncpa [#allocation5], 1 }
 0x207   :  { %267 = vsyncpa [#allocation8], 1 }
 0x208   :  { %268 = vsyncpa [#allocation6], 1 }

</bundles_post_ra>
